<compile_context>
chip_gen: v6e
topology: v6e:2x2x1
jax: 0.10.0
libtpu: 0.0.40
codegen_flags: <defaults>
</compile_context>

<pallas_src>
import math

import jax
import jax.numpy as jnp
from jax.experimental import pallas as pl
from jax.experimental.pallas import tpu as pltpu

INPUT_SIZE = 420
HIDDEN_DIM = 128
ACTION_DIM = 3
OUT_PAD = 128          # lane-dense output width (multiple of 128)
NEG_INF = -1e30        # pad-lane logit bias -> exp underflows to exactly 0


def _round_up(x, m):
    return ((x + m - 1) // m) * m


def _cdiv(a, b):
    return -(-a // b)


# ----------------------------------------------------------------------------
# Kernel: whole forward pass for one batch tile, everything resident in VMEM.
# ----------------------------------------------------------------------------
def _tactical_actor_kernel(x_ref, w1_ref, b1_ref, w2_ref, b2_ref, o_ref):
    f32 = jnp.float32
    # Layer 1 (feature_weights already folded into w1).  Cast x to the packed
    # weight dtype (bf16 by default) so the MXU runs natively; accumulate f32.
    x = x_ref[...].astype(w1_ref.dtype)
    h = jnp.dot(x, w1_ref[...], preferred_element_type=f32) + b1_ref[...]
    h = jnp.maximum(h, 0.0)
    # Layer 2 against the lane-padded W2; pad columns carry bias -1e30.
    logits = (jnp.dot(h.astype(w2_ref.dtype), w2_ref[...],
                      preferred_element_type=f32) + b2_ref[...])
    # Numerically stable softmax over the full 128 lanes (all in f32).  Pad
    # lanes contribute exp(-1e30 - m) == 0 to the denominator, so the result
    # on the real 3 lanes is exactly the 3-way softmax.
    m = jnp.max(logits, axis=-1, keepdims=True)
    e = jnp.exp(logits - m)
    o_ref[...] = e / jnp.sum(e, axis=-1, keepdims=True)


# ----------------------------------------------------------------------------
# Tiling: big, evenly-split batch tiles; prefer tiles that divide the
# 8-rounded batch exactly so no wrapper-side pad copy of x is needed.
# ----------------------------------------------------------------------------
def _choose_tiling(batch, max_batch_tile):
    b8 = _round_up(batch, 8)
    # Minimum #tiles: honour the tile cap, and keep >=2 grid steps when there
    # is enough work so v7x's two TensorCores both get a share.
    n_min = _cdiv(b8, max_batch_tile)
    if b8 >= 16:
        n_min = max(n_min, 2)
    target = _round_up(_cdiv(b8, n_min), 8)        # even-split tile size
    # Prefer a tile (multiple of 8) that divides b8 exactly -> no extra pad
    # copy of x -- as long as it is not pathologically small.
    best = None
    t = target
    while t >= 8:
        if b8 % t == 0:
            best = t
            break
        t -= 8
    if best is not None and best * 4 >= target:
        return best, b8 // best, b8
    # Fallback: even split with <8 wasted rows per tile.
    tb = target
    n = n_min
    return tb, n, tb * n


# ----------------------------------------------------------------------------
# Wrapper
# ----------------------------------------------------------------------------
def tactical_actor_forward(state, packed, *, max_batch_tile=2048):
    # Match the PyTorch flattening behaviour.
    if state.ndim == 3:
        x = state.reshape(state.shape[0], -1)
    else:
        x = state.reshape(1, -1)
    x = x.astype(jnp.float32)
    B = x.shape[0]
    assert x.shape[1] == INPUT_SIZE, x.shape

    # Cap the tile so double-buffered x/out tiles stay well inside the 32 MiB
    # scoped VMEM default on every generation (incl. v7x's 64 MiB physical).
    max_batch_tile = max(8, min(int(max_batch_tile), 4096))
    tb, n_tiles, padded_b = _choose_tiling(B, max_batch_tile)
    if padded_b != B:
        # Only reached when B is not a multiple of 8 or has an awkward
        # factorization; waste is bounded to <8 rows per tile.
        x = jnp.pad(x, ((0, padded_b - B), (0, 0)))

    w1, b1, w2, b2 = packed["w1"], packed["b1"], packed["w2"], packed["b2"]
    grid = (n_tiles,)

    flops = 2 * padded_b * (INPUT_SIZE * HIDDEN_DIM + HIDDEN_DIM * OUT_PAD)
    bytes_accessed = (
        x.size * x.dtype.itemsize
        + w1.size * w1.dtype.itemsize + b1.size * b1.dtype.itemsize
        + w2.size * w2.dtype.itemsize + b2.size * b2.dtype.itemsize
        + padded_b * OUT_PAD * 4)

    out = pl.pallas_call(
        _tactical_actor_kernel,
        grid=grid,
        in_specs=[
            pl.BlockSpec((tb, INPUT_SIZE), lambda i: (i, 0)),          # x tile
            pl.BlockSpec((INPUT_SIZE, HIDDEN_DIM), lambda i: (0, 0)),  # W1 (resident)
            pl.BlockSpec((1, HIDDEN_DIM), lambda i: (0, 0)),           # b1
            pl.BlockSpec((HIDDEN_DIM, OUT_PAD), lambda i: (0, 0)),     # W2 padded
            pl.BlockSpec((1, OUT_PAD), lambda i: (0, 0)),              # b2 padded
        ],
        out_specs=pl.BlockSpec((tb, OUT_PAD), lambda i: (i, 0)),
        out_shape=jax.ShapeDtypeStruct((padded_b, OUT_PAD), jnp.float32),
        compiler_params=pltpu.CompilerParams(
            dimension_semantics=("parallel",)),
        cost_estimate=pl.CostEstimate(
            flops=flops,
            transcendentals=padded_b * OUT_PAD,
            bytes_accessed=bytes_accessed),
    )(x, w1, b1, w2, b2)

    # Drop batch padding and pad lanes (pad lanes are exactly 0 anyway).
    return out[:B, :ACTION_DIM]


# ----------------------------------------------------------------------------
# Parameters: xavier_uniform weights, zero biases, agent-specific feature mask.
# ----------------------------------------------------------------------------
def _xavier_uniform(key, fan_in, fan_out):
    limit = math.sqrt(6.0 / (fan_in + fan_out))
    # stored (in, out) so the kernel computes x @ W (== torch x @ W.T)
    return jax.random.uniform(key, (fan_in, fan_out), jnp.float32, -limit, limit)


def _feature_weights(agent_id):
    if agent_id == "fvg":
        base = [2.0, 2.0, 1.0, 0.5, 0.5, 0.3, 0.3]
    elif agent_id == "momentum":
        base = [0.3, 0.3, 0.5, 0.2, 0.2, 2.0, 2.0]
    elif agent_id == "entry":
        base = [1.0, 1.0, 1.0, 0.8, 0.8, 0.8, 0.8]
    else:
        return jnp.ones((INPUT_SIZE,), jnp.float32)
    return jnp.tile(jnp.array(base, jnp.float32), 60)


def init_params(key, agent_id):
    k1, k2 = jax.random.split(key)
    return {
        "feature_weights": _feature_weights(agent_id),
        "w1": _xavier_uniform(k1, INPUT_SIZE, HIDDEN_DIM),
        "b1": jnp.zeros((HIDDEN_DIM,), jnp.float32),
        "w2": _xavier_uniform(k2, HIDDEN_DIM, ACTION_DIM),
        "b2": jnp.zeros((ACTION_DIM,), jnp.float32),
    }


def pack_params(params, weight_dtype=jnp.bfloat16):
    """One-time packing: fold feature_weights into W1, lane-pad W2/b2,
    down-cast the (DMA-dominant) weight matrices to `weight_dtype`."""
    fw = params["feature_weights"]
    w1 = (params["w1"] * fw[:, None]).astype(weight_dtype)
    w2 = jnp.zeros((HIDDEN_DIM, OUT_PAD), weight_dtype)
    w2 = w2.at[:, :ACTION_DIM].set(params["w2"].astype(weight_dtype))
    b2 = jnp.full((1, OUT_PAD), NEG_INF, jnp.float32)
    b2 = b2.at[0, :ACTION_DIM].set(params["b2"])
    return {
        "w1": w1,
        "b1": params["b1"].reshape(1, HIDDEN_DIM).astype(jnp.float32),
        "w2": w2,
        "b2": b2,
    }


# ----------------------------------------------------------------------------
# Pure-JAX references
# ----------------------------------------------------------------------------
def _flatten(state):
    if state.ndim == 3:
        return state.reshape(state.shape[0], -1)
    return state.reshape(1, -1)


def _reference(state, params):
    """Exact f32 PyTorch forward (unfolded feature weights)."""
    x = _flatten(state) * params["feature_weights"]
    h = jnp.maximum(x @ params["w1"] + params["b1"], 0.0)
    logits = h @ params["w2"] + params["b2"]
    return jax.nn.softmax(logits, axis=-1)


def _packed_reference(state, packed):
    """Mirrors the kernel's numerics (packed weight dtype, f32 accumulation)."""
    x = _flatten(state).astype(packed["w1"].dtype)
    h = jnp.dot(x, packed["w1"], preferred_element_type=jnp.float32) + packed["b1"]
    h = jnp.maximum(h, 0.0).astype(packed["w2"].dtype)
    logits = (jnp.dot(h, packed["w2"], preferred_element_type=jnp.float32)
              + packed["b2"])
    return jax.nn.softmax(logits, axis=-1)[:, :ACTION_DIM]


if __name__ == "__main__":
    key = jax.random.PRNGKey(0)
    kp, kx1, kx2 = jax.random.split(key, 3)

    params = init_params(kp, "fvg")
    packed = pack_params(params)                       # bf16 weights (default)

    # ---- small batch (single tile, no padding) ----
    B1 = 8
    state1 = jax.random.normal(kx1, (B1, 60, 7), jnp.float32)  # flattens to (B, 420)
    probs1 = jax.block_until_ready(tactical_actor_forward(state1, packed))
    assert probs1.shape == (B1, ACTION_DIM), probs1.shape
    # vs numerics-matched reference (same bf16 weight quantization): tight
    err_q = float(jnp.max(jnp.abs(probs1 - _packed_reference(state1, packed))))
    assert err_q < 1e-4, err_q
    # vs exact f32 PyTorch forward: only bf16 weight quantization error
    err_f = float(jnp.max(jnp.abs(probs1 - _reference(state1, params))))
    assert err_f < 3e-2, err_f
    assert float(jnp.max(jnp.abs(jnp.sum(probs1, axis=-1) - 1.0))) < 1e-5

    # ---- ragged batch (multi-tile grid + batch padding path) ----
    B2 = 37
    state2 = jax.random.normal(kx2, (B2, 60, 7), jnp.float32)
    probs2 = jax.block_until_ready(tactical_actor_forward(state2, packed))
    assert probs2.shape == (B2, ACTION_DIM), probs2.shape
    err_q2 = float(jnp.max(jnp.abs(probs2 - _packed_reference(state2, packed))))
    assert err_q2 < 1e-4, err_q2
    assert float(jnp.max(jnp.abs(jnp.sum(probs2, axis=-1) - 1.0))) < 1e-5

    print("KERNEL_OK")
</pallas_src>

<mosaic_0001>
module attributes {stable_mosaic.version = 11 : i64} {
  func.func @_tactical_actor_kernel(%arg0: i32, %arg1: memref<8x420xf32, #tpu.memory_space<vmem>>, %arg2: memref<420x128xbf16, #tpu.memory_space<vmem>>, %arg3: memref<1x128xf32, #tpu.memory_space<vmem>>, %arg4: memref<128x128xbf16, #tpu.memory_space<vmem>>, %arg5: memref<1x128xf32, #tpu.memory_space<vmem>>, %arg6: memref<8x128xf32, #tpu.memory_space<vmem>>) attributes {dimension_semantics = [#tpu.dimension_semantics<parallel>], iteration_bounds = array<i64: 1>, scalar_prefetch = 0 : i64, scratch_operands = 0 : i64, tpu.core_type = #tpu.core_type<tc>, window_params = [{transform_indices = @transform_0, window_bounds = array<i64: 8, 420>}, {pipeline_mode = #tpu.pipeline_mode<synchronous>, transform_indices = @transform_1, window_bounds = array<i64: 420, 128>}, {pipeline_mode = #tpu.pipeline_mode<synchronous>, transform_indices = @transform_2, window_bounds = array<i64: 1, 128>}, {pipeline_mode = #tpu.pipeline_mode<synchronous>, transform_indices = @transform_3, window_bounds = array<i64: 128, 128>}, {pipeline_mode = #tpu.pipeline_mode<synchronous>, transform_indices = @transform_4, window_bounds = array<i64: 1, 128>}, {transform_indices = @transform_5, window_bounds = array<i64: 8, 128>}]} {
    %c0 = arith.constant 0 : index
    %c0_0 = arith.constant 0 : index
    %0 = vector.load %arg1[%c0, %c0_0] : memref<8x420xf32, #tpu.memory_space<vmem>>, vector<8x420xf32>
    %1 = arith.truncf %0 : vector<8x420xf32> to vector<8x420xbf16>
    %c0_1 = arith.constant 0 : index
    %c0_2 = arith.constant 0 : index
    %2 = vector.load %arg2[%c0_1, %c0_2] : memref<420x128xbf16, #tpu.memory_space<vmem>>, vector<420x128xbf16>
    %cst = arith.constant dense<0.000000e+00> : vector<8x128xf32>
    %3 = tpu.matmul %1, %2, %cst {dimension_numbers = #tpu.dot_dimension_numbers<[1], [0], [0], [1], [0, 0, 1, 1], [], []>} : vector<8x420xbf16>, vector<420x128xbf16>, vector<8x128xf32> -> vector<8x128xf32>
    %c0_3 = arith.constant 0 : index
    %c0_4 = arith.constant 0 : index
    %4 = vector.load %arg3[%c0_3, %c0_4] : memref<1x128xf32, #tpu.memory_space<vmem>>, vector<1x128xf32>
    %5 = vector.broadcast %4 : vector<1x128xf32> to vector<8x128xf32>
    %6 = arith.addf %3, %5 : vector<8x128xf32>
    %cst_5 = arith.constant 0.000000e+00 : f32
    %7 = vector.broadcast %cst_5 : f32 to vector<8x128xf32>
    %8 = arith.maximumf %6, %7 : vector<8x128xf32>
    %9 = arith.truncf %8 : vector<8x128xf32> to vector<8x128xbf16>
    %c0_6 = arith.constant 0 : index
    %c0_7 = arith.constant 0 : index
    %10 = vector.load %arg4[%c0_6, %c0_7] : memref<128x128xbf16, #tpu.memory_space<vmem>>, vector<128x128xbf16>
    %cst_8 = arith.constant dense<0.000000e+00> : vector<8x128xf32>
    %11 = tpu.matmul %9, %10, %cst_8 {dimension_numbers = #tpu.dot_dimension_numbers<[1], [0], [0], [1], [0, 0, 1, 1], [], []>} : vector<8x128xbf16>, vector<128x128xbf16>, vector<8x128xf32> -> vector<8x128xf32>
    %c0_9 = arith.constant 0 : index
    %c0_10 = arith.constant 0 : index
    %12 = vector.load %arg5[%c0_9, %c0_10] : memref<1x128xf32, #tpu.memory_space<vmem>>, vector<1x128xf32>
    %13 = vector.broadcast %12 : vector<1x128xf32> to vector<8x128xf32>
    %14 = arith.addf %11, %13 : vector<8x128xf32>
    %cst_11 = arith.constant dense<0xFF800000> : vector<8xf32>
    %15 = vector.multi_reduction <maximumf>, %14, %cst_11 [1] : vector<8x128xf32> to vector<8xf32>
    %16 = vector.shape_cast %15 : vector<8xf32> to vector<8x1xf32>
    %17 = vector.broadcast %16 : vector<8x1xf32> to vector<8x128xf32>
    %18 = arith.subf %14, %17 : vector<8x128xf32>
    %19 = math.exp %18 : vector<8x128xf32>
    %cst_12 = arith.constant dense<0.000000e+00> : vector<8xf32>
    %20 = vector.multi_reduction <add>, %19, %cst_12 [1] : vector<8x128xf32> to vector<8xf32>
    %21 = vector.shape_cast %20 : vector<8xf32> to vector<8x1xf32>
    %22 = vector.broadcast %21 : vector<8x1xf32> to vector<8x128xf32>
    %23 = arith.divf %19, %22 : vector<8x128xf32>
    %c0_13 = arith.constant 0 : index
    %c0_14 = arith.constant 0 : index
    %24 = vector.load %arg6[%c0_13, %c0_14] : memref<8x128xf32, #tpu.memory_space<vmem>>, vector<8x128xf32>
    tpu.vector_store %arg6[%c0_13, %c0_14], %23 {strides = array<i32>} : memref<8x128xf32, #tpu.memory_space<vmem>>, vector<8x128xf32>,
    return
  }
  func.func @transform_0(%arg0: i32) -> (i32, i32) {
    %c0_i32 = arith.constant 0 : i32
    %c0_i32_0 = arith.constant 0 : i32
    return %arg0, %c0_i32 : i32, i32
  }
  func.func @transform_1(%arg0: i32) -> (i32, i32) {
    %c0_i32 = arith.constant 0 : i32
    %c0_i32_0 = arith.constant 0 : i32
    %c0_i32_1 = arith.constant 0 : i32
    return %c0_i32, %c0_i32_0 : i32, i32
  }
  func.func @transform_2(%arg0: i32) -> (i32, i32) {
    %c0_i32 = arith.constant 0 : i32
    %c0_i32_0 = arith.constant 0 : i32
    %c0_i32_1 = arith.constant 0 : i32
    return %c0_i32, %c0_i32_0 : i32, i32
  }
  func.func @transform_3(%arg0: i32) -> (i32, i32) {
    %c0_i32 = arith.constant 0 : i32
    %c0_i32_0 = arith.constant 0 : i32
    %c0_i32_1 = arith.constant 0 : i32
    return %c0_i32, %c0_i32_0 : i32, i32
  }
  func.func @transform_4(%arg0: i32) -> (i32, i32) {
    %c0_i32 = arith.constant 0 : i32
    %c0_i32_0 = arith.constant 0 : i32
    %c0_i32_1 = arith.constant 0 : i32
    return %c0_i32, %c0_i32_0 : i32, i32
  }
  func.func @transform_5(%arg0: i32) -> (i32, i32) {
    %c0_i32 = arith.constant 0 : i32
    %c0_i32_0 = arith.constant 0 : i32
    return %arg0, %c0_i32 : i32, i32
  }
}

</mosaic_0001>

<bundles_post_ra>
// kernel: tpu_custom_call.1
= control target key start
LH: loop header
LB: loop body
LE: loop exit
PB: predicated region body
PF: predicated region fallthrough
CT: control target
= control target key end

     0   :  { %10 = vsyncpa [#allocation3], 0  ;;  %s806_s0 = inlined_call_operand.hbm [shape: f32[8,420], index: 0, kind: input, shape index: {}]   ;;  %s807_s1 = inlined_call_operand.hbm [shape: bf16[420,128], index: 1, kind: input, shape index: {}]   ;;  %s808_s2 = inlined_call_operand.vmem [shape: f32[1,128], index: 2, kind: input, shape index: {}]   ;;  %s809_s3 = inlined_call_operand.hbm [shape: bf16[128,128], index: 3, kind: input, shape index: {}]   ;;  %s810_s4 = inlined_call_operand.vmem [shape: f32[1,128], index: 4, kind: input, shape index: {}]   ;;  %s811_s5 = inlined_call_operand.hbm [shape: f32[8,128], index: 5, kind: output, shape index: {}]  }
   0x1   :  { %11 = vsyncpa [#allocation6], 0 }
   0x2   :  { %12 = vsyncpa [#allocation4], 0  ;;  %s738_s18 = smov [#allocation5]  }
   0x3   :  { %s28_s19 = sshll.u32 %s738_s18, 4  ;;  %s29_s19 = int_to_ptr.vmem [resolvable:$true] %s28_s19 }
   0x4   :  { %s660_s20 = scalar_lea.vmem %s29_s19, 3392  ;;  %p665_p1 = scmp.lt.s32.totalorder %s29_s19, %s29_s19 }
   0x5   :  { %p661_p0 = scmp.ne.s32.totalorder %s29_s19, %s660_s20  ;;  %p666_p2 = scmp.lt.s32.totalorder %s660_s20, %s660_s20 }
   0x7   :  { %p667_p3 = por %p666_p2, %p665_p1 }
   0x9   :  { %p668_p4 = pnand %p667_p3, %p661_p0 }
   0xb   :  { %671 = shalt.err (!%p668_p4)
}
   0xc   :  { %s739_s21 = smov 64   ;;  %s740_s22 = smov 4  }
   0xd   :  { %34 = dma.hbm_to_vmem [thread:$0]  %s807_s1, 3392, %s29_s19, [#allocation6], %s739_s21, %s739_s21, %s740_s22  }
   0xe   :  { %s741_s25 = smov [#allocation2]   ;;  %s742_s27 = smov [#allocation7]  }
   0xf   :  { %s19_s26 = sshll.u32 %s741_s25, 4  ;;  %s42_s28 = sshll.u32 %s742_s27, 4  ;;  %s20_s26 = int_to_ptr.vmem [resolvable:$true] %s19_s26  ;;  %s43_s28 = int_to_ptr.vmem [resolvable:$true] %s42_s28 }
  0x10   :  { %s680_s29 = scalar_lea.vmem %s20_s26, 512  ;;  %p685_p6 = scmp.lt.s32.totalorder %s20_s26, %s20_s26 }
  0x11   :  { %p681_p5 = scmp.ne.s32.totalorder %s20_s26, %s680_s29  ;;  %p686_p7 = scmp.lt.s32.totalorder %s680_s29, %s680_s29 }
  0x13   :  { %p687_p8 = por %p686_p7, %p685_p6 }
  0x15   :  { %p688_p9 = pnand %p687_p8, %p681_p5 }
  0x17   :  { %691 = shalt.err (!%p688_p9)
}
  0x18   :  { %22 = dma.hbm_to_vmem [thread:$0]  %s806_s0, 512, %s20_s26, [#allocation3]  }
  0x19   :  { %s700_s7 = scalar_lea.vmem %s43_s28, 1024  ;;  %p705_p11 = scmp.lt.s32.totalorder %s43_s28, %s43_s28 }
  0x1a   :  { %p701_p10 = scmp.ne.s32.totalorder %s43_s28, %s700_s7  ;;  %p706_p12 = scmp.lt.s32.totalorder %s700_s7, %s700_s7 }
  0x1c   :  { %p707_p13 = por %p706_p12, %p705_p11 }
  0x1e   :  { %p708_p0 = pnand %p707_p13, %p701_p10 }
  0x20   :  { %711 = shalt.err (!%p708_p0)
}
  0x21   :  { %48 = dma.hbm_to_vmem [thread:$0]  %s809_s3, 1024, %s43_s28, [#allocation6], %s739_s21, %s739_s21, %s740_s22  }
  0x22   :  { %732 = dma.done.wait [#allocation3], 512  }
  0x23   :  { %733 = vsyncadd [#allocation3], 4294966784 }
  0x24   :  { %734 = dma.done.wait [#allocation6], 4416  }
  0x25   :  { %735 = vsyncadd [#allocation6], 4294962880  ;;  %v743_v0 = vmov 0   ;;  %v613_v1 = vld [vmem:[#allocation5 + $0x78] sm:$0xff]   ;;  %v616_v4 = vld [vmem:[#allocation5 + $0x70] sm:$0xff]   ;;  %vm288_vm0 = vcmask 293888  }
  0x26   :  { %336 = vmatprep.subr.bf16.mxu1 %v743_v0  ;;  %v614_v2 = vld [vmem:[#allocation5 + $0xb8] sm:$0xff]   ;;  %553 = vmatprep.subr.bf16.mxu0 %v613_v1  ;;  %v617_v5 = vld [vmem:[#allocation5 + $0xb0] sm:$0xff]   ;;  %v619_v7 = vld [vmem:[#allocation5 + $0x68] sm:$0xff]   ;;  %vm292_vm1 = vcmask 1041408   ;;  %v744_v34 = vmov 0.0   ;;  %vm745_vm2 = vmmov 0  }
  0x27   :  { %v615_v3 = vld [vmem:[#allocation5 + $0x38] sm:$0xff]   ;;  %337 = vmatpush1.bf16.msra.mxu1 %v614_v2  ;;  %v618_v6 = vld [vmem:[#allocation5 + $0x30] sm:$0xff]   ;;  %v620_v8 = vld [vmem:[#allocation5 + $0xa8] sm:$0xff]  }
  0x28   :  { %554 = vmatpush3.bf16.msra.mxu0 %v615_v3  ;;  %338 = vmatprep.subr.bf16.mxu1 %v743_v0  ;;  %v621_v9 = vld [vmem:[#allocation5 + $0x28] sm:$0xff]   ;;  %v622_v10 = vld [vmem:[#allocation5 + $0x60] sm:$0xff]   ;;  %v625_v13 = vld [vmem:[#allocation5 + $0x58] sm:$0xff]  }
  0x29   :  { %555 = vmatprep.subr.bf16.mxu0 %v616_v4  ;;  %v623_v11 = vld [vmem:[#allocation5 + $0xa0] sm:$0xff]   ;;  %v626_v14 = vld [vmem:[#allocation5 + $0x98] sm:$0xff]   ;;  %v628_v16 = vld [vmem:[#allocation5 + $0x50] sm:$0xff]  }
  0x2a   :  { %v624_v12 = vld [vmem:[#allocation5 + $0x20] sm:$0xff]   ;;  %v627_v15 = vld [vmem:[#allocation5 + $0x18] sm:$0xff]   ;;  %v629_v17 = vld [vmem:[#allocation5 + $0x90] sm:$0xff]  }
  0x2b   :  { %339 = vmatpush1.bf16.msra.mxu1 %v617_v5  ;;  %v630_v18 = vld [vmem:[#allocation5 + $0x10] sm:$0xff]   ;;  %v631_v19 = vld [vmem:[#allocation5 + $0x48] sm:$0xff]   ;;  %v634_v23 = vld [vmem:[#allocation5 + $0x40] sm:$0xff]  }
  0x2c   :  { %556 = vmatpush3.bf16.msra.mxu0 %v618_v6  ;;  %340 = vmatprep.subr.bf16.mxu1 %v743_v0  ;;  %v632_v20 = vld [vmem:[#allocation5 + $0x88] sm:$0xff]   ;;  %v635_v24 = vld [vmem:[#allocation5 + $0x80] sm:$0xff]   ;;  %v637_v27 = vld [vmem:[#allocation5 + $0xd0] ss:$0 sps:$4 sm:$0x33]  }
  0x2d   :  { %557 = vmatprep.subr.bf16.mxu0 %v619_v7  ;;  %v633_v21 = vld [vmem:[#allocation5 + $0x8] sm:$0xff]   ;;  %v636_v26 = vld [vmem:[#allocation5] sm:$0xff]   ;;  %v64_v28 = vld [vmem:[#allocation2 + $0x18] sm:$0xff]  ;;  %v294_v32 = vsel %vm292_vm1, %v637_v27, 0 }
  0x2e   :  { %v62_v22 = vld [vmem:[#allocation2 + $0x8] sm:$0xff]  ;;  %v61_v29 = vld [vmem:[#allocation2] sm:$0xff]  ;;  %v68_v30 = vpack.c.bf16 %v64_v28, %v64_v28  ;;  %v63_v38 = vld [vmem:[#allocation2 + $0x10] sm:$0xff] }
  0x2f   :  { %341 = vmatpush1.bf16.msra.mxu1 %v620_v8  ;;  %v66_v25 = vpack.c.bf16 %v62_v22, %v62_v22  ;;  %v65_v31 = vpack.c.bf16 %v61_v29, %v61_v29  ;;  %v640_v33 = vld [vmem:[#allocation7 + $0x38] sm:$0xff]   ;;  %v641_v36 = vld [vmem:[#allocation7 + $0x30] sm:$0xff]   ;;  %v642_v39 = vld [vmem:[#allocation7 + $0x28] sm:$0xff]   ;;  %v67_v40 = vpack.c.bf16 %v63_v38, %v63_v38 }
  0x30   :  { %558 = vmatpush3.bf16.msra.mxu0 %v621_v9  ;;  %342 = vmatprep.subr.bf16.mxu1 %v743_v0  ;;  %v638_v35 = vld [vmem:[#allocation5 + $0xc8] sm:$0xff]   ;;  %v639_v37 = vld [vmem:[#allocation5 + $0xc0] sm:$0xff]   ;;  %v643_v41 = vld [vmem:[#allocation7 + $0x20] sm:$0xff]  }
  0x31   :  { %559 = vmatprep.subr.bf16.mxu0 %v622_v10  ;;  %328 = vmatprep.mubr.bf16.mxu0 %v66_v25  ;;  %v644_v42 = vld [vmem:[#allocation7 + $0x18] sm:$0xff]   ;;  %v645_v43 = vld [vmem:[#allocation7 + $0x10] sm:$0xff]   ;;  %v646_v44 = vld [vmem:[#allocation7 + $0x8] sm:$0xff]  }
  0x32   :  { %543 = vmatprep.mubr.msk.bf16.mxu1 %vm288_vm0, %v68_v30  ;;  %v647_v45 = vld [vmem:[#allocation7] sm:$0xff]   ;;  %v515_v51 = vld [vmem:[%s808_s2] ss:$0 sm:$0xff]  ;;  %s746_s2 = smov [#allocation8]  }
  0x33   :  { %343 = vmatpush1.bf16.msra.mxu1 %v623_v11  ;;  %v544_v60 = vld [vmem:[%s810_s4] ss:$0 sm:$0xff]  ;;  %s505_s11 = sshll.u32 %s746_s2, 4  ;;  %s506_s11 = int_to_ptr.vmem [resolvable:$true] %s505_s11 }
  0x34   :  { %560 = vmatpush3.bf16.msra.mxu0 %v624_v12  ;;  %344 = vmatprep.subr.bf16.mxu1 %v743_v0  ;;  %s712_s4 = scalar_lea.vmem %s506_s11, 128  ;;  %p717_p2 = scmp.lt.s32.totalorder %s506_s11, %s506_s11 }
  0x35   :  { %561 = vmatprep.subr.bf16.mxu0 %v625_v13  ;;  %p713_p1 = scmp.ne.s32.totalorder %s506_s11, %s712_s4  ;;  %p718_p3 = scmp.lt.s32.totalorder %s712_s4, %s712_s4 }
  0x37   :  { %345 = vmatpush1.bf16.msra.mxu1 %v626_v14  ;;  %p719_p4 = por %p718_p3, %p717_p2 }
  0x38   :  { %562 = vmatpush3.bf16.msra.mxu0 %v627_v15  ;;  %346 = vmatprep.subr.bf16.mxu1 %v743_v0 }
  0x39   :  { %563 = vmatprep.subr.bf16.mxu0 %v628_v16  ;;  %p720_p5 = pnand %p719_p4, %p713_p1 }
  0x3b   :  { %347 = vmatpush1.bf16.msra.mxu1 %v629_v17 }
  0x3c   :  { %564 = vmatpush3.bf16.msra.mxu0 %v630_v18  ;;  %348 = vmatprep.subr.bf16.mxu1 %v743_v0 }
  0x3d   :  { %565 = vmatprep.subr.bf16.mxu0 %v631_v19 }
  0x3f   :  { %349 = vmatpush1.bf16.msra.mxu1 %v632_v20 }
  0x40   :  { %566 = vmatpush3.bf16.msra.mxu0 %v633_v21  ;;  %350 = vmatprep.subr.bf16.mxu1 %v743_v0 }
  0x41   :  { %567 = vmatprep.subr.bf16.mxu0 %v634_v23 }
  0x43   :  { %351 = vmatpush1.bf16.msra.mxu1 %v635_v24 }
  0x44   :  { %568 = vmatpush3.bf16.msra.mxu0 %v636_v26  ;;  %362 = vmatprep.subr.bf16.mxu1 %v743_v0 }
  0x45   :  { %584 = vmatprep.subr.bf16.mxu0 %v744_v34 }
  0x47   :  { %329 = vmatmul.mubr.bf16.vlgmr.msra.gmra.mxu0 %v65_v31  ;;  %363 = vmatpush2.bf16.msra.mxu1 %v294_v32 }
  0x48   :  { %364 = vmatprep.subr.bf16.mxu1 %v743_v0  ;;  %585 = vmatpush3.bf16.msra.mxu0 %v640_v33 }
  0x49   :  { %586 = vmatprep.subr.bf16.mxu0 %v744_v34  ;;  %600 = vmatprep.mubr.msk.bf16.mxu0 %vm745_vm2, %v744_v34 }
  0x4b   :  { %365 = vmatpush2.bf16.msra.mxu1 %v638_v35 }
  0x4c   :  { %366 = vmatprep.subr.bf16.mxu1 %v743_v0  ;;  %587 = vmatpush3.bf16.msra.mxu0 %v641_v36 }
  0x4d   :  { %588 = vmatprep.subr.bf16.mxu0 %v744_v34 }
  0x4f   :  { %367 = vmatpush2.bf16.msra.mxu1 %v639_v37 }
  0x50   :  { %589 = vmatpush3.bf16.msra.mxu0 %v642_v39 }
  0x51   :  { %590 = vmatprep.subr.bf16.mxu0 %v744_v34 }
  0x52   :  { %369 = vmatmul.mubr.bf16.vlgmr.msra.gmra.mxu1 %v67_v40 }
  0x54   :  { %591 = vmatpush3.bf16.msra.mxu0 %v643_v41 }
  0x55   :  { %592 = vmatprep.subr.bf16.mxu0 %v744_v34 }
  0x58   :  { %593 = vmatpush3.bf16.msra.mxu0 %v644_v42 }
  0x59   :  { %594 = vmatprep.subr.bf16.mxu0 %v744_v34 }
  0x5c   :  { %595 = vmatpush3.bf16.msra.mxu0 %v645_v43 }
  0x5d   :  { %596 = vmatprep.subr.bf16.mxu0 %v744_v34 }
  0x60   :  { %597 = vmatpush3.bf16.msra.mxu0 %v646_v44 }
  0x61   :  { %598 = vmatprep.subr.bf16.mxu0 %v744_v34 }
  0x64   :  { %599 = vmatpush3.bf16.msra.mxu0 %v647_v45 }
 0x107   :  { %v569_v46 = vpop.f32.mrf.mxu0 }
 0x109   :  { %v570_v47 = vpop.f32.mrf.mxu0 }
 0x10a   :  { %v571_v49 = vadd.f32 %v570_v47, %v569_v46 }
 0x10b   :  { %v572_v48 = vpop.f32.mrf.mxu0 }
 0x10c   :  { %v331_v52 = vadd.f32 %v571_v49, %v515_v51 }
 0x10d   :  { %v573_v50 = vpop.f32.mrf.mxu0 }
 0x112   :  { %v370_v53 = vpop.f32.mrf.mxu1 }
 0x113   :  { %v371_v54 = vadd.f32 %v370_v53, %v331_v52 }
 0x114   :  { %v372_v55 = vpop.f32.mrf.mxu1 }
 0x115   :  { %v376_v56 = vmax.f32 %v371_v54, 0.0 }
 0x116   :  { %v373_v57 = vpop.f32.mrf.mxu1 }
 0x117   :  { %v377_v58 = vpack.c.bf16 %v376_v56, %v376_v56 }
 0x118   :  { %v374_v59 = vpop.f32.mrf.mxu1 }
 0x119   :  { %601 = vmatmul.mubr.bf16.vlgmr.msra.gmra.mxu0 %v377_v58 }
 0x1d9   :  { %v483_v61 = vpop.f32.mrf.mxu0 }
 0x1da   :  { %v484_v62 = vadd.f32 %v544_v60, %v483_v61 }
 0x1db   :  { %v602_v63 = vpop.f32.mrf.mxu0 }
 0x1dc   :  { %489 = vmax.xlane.f32.xlu0 %v484_v62 }
 0x1dd   :  { %v486_v0 = vpop.f32.mrf.mxu0 }
 0x1df   :  { %v603_v1 = vpop.f32.mrf.mxu0 }
 0x265   :  { %v490_v2 = vpop.xlane.xlu0 %489 }
 0x266   :  { %v491_v3 = vsub.f32 %v484_v62, %v490_v2 }
 0x268   :  { %v492_v4 = vmul.f32 1.442695, %v491_v3 }
 0x26a   :  { %648 = vpow2.f32 %v492_v4 }
 0x277   :  { %v649_v5 = vpop.eup %648 }
 0x278   :  { %494 = vadd.xlane.f32.xlu0 %v649_v5 }
 0x301   :  { %v495_v6 = vpop.xlane.xlu0 %494 }
 0x302   :  { %650 = vrcp.f32 %v495_v6 }
 0x30f   :  { %v651_v7 = vpop.eup %650 }
 0x310   :  { %v497_v8 = vmul.f32 %v651_v7, %v649_v5 }
 0x312   :  { %498 = vst [vmem:[#allocation8] sm:$0xff] %v497_v8 }
 0x313   :  { %723 = shalt.err (!%p720_p5)
}
 0x314   :  { %508 = dma.vmem_to_hbm [thread:$0]  %s506_s11, 128, %s811_s5, [#allocation4]  }
 0x315   :  { %736 = dma.done.wait [#allocation4], 128  }
 0x316   :  { %737 = vsyncadd [#allocation4], 4294967168 }
 0x317   :  { %512 = vsyncpa [#allocation3], 1 }
 0x318   :  { %513 = vsyncpa [#allocation6], 1 }
 0x319   :  { %514 = vsyncpa [#allocation4], 1 }

</bundles_post_ra>
